<compile_context>
chip_gen: v7x
topology: tpu7x:2x2x1
jax: 0.10.0
libtpu: 0.0.40
codegen_flags: <defaults>
</compile_context>

<pallas_src>
import functools

import jax
import jax.numpy as jnp
from jax import lax
from jax.experimental import pallas as pl
from jax.experimental.pallas import tpu as pltpu
import numpy as np


# ---------------- geometry implied by the PyTorch module (fc1.in = 352) -----
H_IN, W_IN = 28, 10                                   # input spatial size
K1, C1_OUT = 5, 6                                     # conv1: 5x5, 1 -> 6
K2, C2_OUT = 2, 16                                    # conv2: 2x2, 6 -> 16
CONV1_H, CONV1_W = H_IN - K1 + 1, W_IN - K1 + 1       # 24, 6
POOL_H, POOL_W = CONV1_H // 2, CONV1_W // 2           # 12, 3
CONV2_H, CONV2_W = POOL_H - K2 + 1, POOL_W - K2 + 1   # 11, 2
N_FLAT = C2_OUT * CONV2_H * CONV2_W                   # 352
N_HID = 120
LANE = 128
D_IN = H_IN * W_IN                                    # 280
D_POOL = POOL_H * POOL_W * C1_OUT                     # 216 live pooled lanes
D_POOL_PAD = 256                                      # lane-aligned group width
D_A1 = 4 * D_POOL_PAD                                 # 1024 conv1 output lanes


# ------------------------------- Pallas kernel ------------------------------

def _cnn_fused_kernel(x_ref, w1_ref, b1_ref, w2_ref, b2_ref,
                      fw1_ref, fb1_ref, fw2_ref, fb2_ref, o_ref):
    # conv1 (bf16 x bf16 -> f32 acc) + bias + relu, all elementwise in f32.
    a1 = jnp.dot(x_ref[...], w1_ref[...], preferred_element_type=jnp.float32)
    a1 = jnp.maximum(a1 + b1_ref[...], 0.0)                        # (NB, 1024)

    # 2x2 max-pool == elementwise max over four 128-aligned 256-lane groups.
    g = D_POOL_PAD
    pooled = jnp.maximum(jnp.maximum(a1[:, 0:g], a1[:, g:2 * g]),
                         jnp.maximum(a1[:, 2 * g:3 * g], a1[:, 3 * g:4 * g]))  # (NB, 256)

    # conv2 + relu: output lanes already in torch.flatten(x, 1) order.
    a2 = jnp.dot(pooled.astype(jnp.bfloat16), w2_ref[...],
                 preferred_element_type=jnp.float32)
    a2 = jnp.maximum(a2 + b2_ref[...], 0.0)                        # (NB, 352)

    # fc1 + relu (padded to 128 lanes; pad lanes stay exactly 0).
    h = jnp.dot(a2.astype(jnp.bfloat16), fw1_ref[...],
                preferred_element_type=jnp.float32)
    h = jnp.maximum(h + fb1_ref[...], 0.0)                         # (NB, 128)

    # fc2: lane-dense (NB, 128) f32 store; real classes occupy the first lanes.
    o_ref[...] = jnp.dot(h.astype(jnp.bfloat16), fw2_ref[...],
                         preferred_element_type=jnp.float32) + fb2_ref[...]


# ------------------- parameter pre-lowering (once, outside jit) -------------

def prepare_params(params):
    """Convert PyTorch-layout params into dense, lane-aligned bf16 operands
    consumed by the fused kernel (runs once, in numpy, outside jit)."""
    w1, b1, w2, b2, fw1, fb1, fw2, fb2 = [np.asarray(p, np.float32) for p in params]
    num_classes = fw2.shape[0]
    assert num_classes <= LANE

    # conv1 as a (280, 1024) matmul.  Input lane = h*10 + w.  Output lane =
    # (di*2+dj)*256 + (p*3+q)*6 + oc, where the conv1 output position is
    # (i, j) = (2p+di, 2q+dj): the four 2x2 max-pool candidates land in four
    # contiguous, 128-aligned 256-lane groups (lanes 216..255 of each group are
    # zero weight + zero bias padding).
    W1m = np.zeros((D_IN, D_A1), np.float32)
    B1m = np.zeros((1, D_A1), np.float32)
    for di in range(2):
        for dj in range(2):
            for p in range(POOL_H):
                for q in range(POOL_W):
                    i, j = 2 * p + di, 2 * q + dj
                    for oc in range(C1_OUT):
                        col = (di * 2 + dj) * D_POOL_PAD + (p * POOL_W + q) * C1_OUT + oc
                        B1m[0, col] = b1[oc]
                        for ki in range(K1):
                            for kj in range(K1):
                                W1m[(i + ki) * W_IN + (j + kj), col] = w1[oc, 0, ki, kj]

    # conv2 as a (256, 352) matmul.  Input lane = (p'*3+q')*6 + c (the pooled
    # layout above; rows 216..255 are zero).  Output lane = oc2*22 + p2*2 + r,
    # which is exactly torch.flatten(x, 1) order of the (N, 16, 11, 2) conv2
    # activation.
    W2m = np.zeros((D_POOL_PAD, N_FLAT), np.float32)
    B2m = np.zeros((1, N_FLAT), np.float32)
    for oc2 in range(C2_OUT):
        for p2 in range(CONV2_H):
            for r in range(CONV2_W):
                col = oc2 * (CONV2_H * CONV2_W) + p2 * CONV2_W + r
                B2m[0, col] = b2[oc2]
                for c in range(C1_OUT):
                    for da in range(K2):
                        for db in range(K2):
                            W2m[((p2 + da) * POOL_W + (r + db)) * C1_OUT + c, col] = \
                                w2[oc2, c, da, db]

    # fc1 / fc2: pre-transposed and zero-padded to 128 lanes (no .T inside jit,
    # MXU-aligned N dim, unmasked final stores).
    FW1 = np.zeros((N_FLAT, LANE), np.float32); FW1[:, :N_HID] = fw1.T
    FB1 = np.zeros((1, LANE), np.float32);      FB1[0, :N_HID] = fb1
    FW2 = np.zeros((LANE, LANE), np.float32);   FW2[:N_HID, :num_classes] = fw2.T
    FB2 = np.zeros((1, LANE), np.float32);      FB2[0, :num_classes] = fb2

    # Weights in bf16 (MXU operands); biases stay f32 (added post-accumulation).
    return (jnp.asarray(W1m, jnp.bfloat16), jnp.asarray(B1m, jnp.float32),
            jnp.asarray(W2m, jnp.bfloat16), jnp.asarray(B2m, jnp.float32),
            jnp.asarray(FW1, jnp.bfloat16), jnp.asarray(FB1, jnp.float32),
            jnp.asarray(FW2, jnp.bfloat16), jnp.asarray(FB2, jnp.float32))


# --------------------------------- wrapper ----------------------------------

def _pick_batch_tile(N):
    """Batch rows per grid step.  16-row granularity (bf16 sublane packing),
    >= 2 grid steps whenever N > 16 (keeps both v7x TensorCores busy via the
    'parallel' axis), capped at 512 rows so VMEM stays well under the default
    scoped limit on every generation while amortizing per-step overhead."""
    if N <= 16:
        return 16
    half = -(-N // 2)                      # ceil(N / 2)
    return min(512, ((half + 15) // 16) * 16)


def cnn_forward(x, kparams, num_classes):
    """x: (N, 1, 28, 10) float32 NCHW.  kparams: output of prepare_params()."""
    W1m, B1m, W2m, B2m, FW1, FB1, FW2, FB2 = kparams
    N = x.shape[0]
    # Row-major flatten, then bf16 for the MXU (all accumulation stays f32).
    x2 = x.reshape(N, D_IN).astype(jnp.bfloat16)

    nb = _pick_batch_tile(N)
    n_pad = ((N + nb - 1) // nb) * nb
    if n_pad != N:
        x2 = jnp.pad(x2, ((0, n_pad - N), (0, 0)))
    grid = (n_pad // nb,)

    out = pl.pallas_call(
        _cnn_fused_kernel,
        out_shape=jax.ShapeDtypeStruct((n_pad, LANE), jnp.float32),
        grid=grid,
        in_specs=[
            pl.BlockSpec((nb, D_IN), lambda b: (b, 0)),             # x tile (bf16)
            pl.BlockSpec((D_IN, D_A1), lambda b: (0, 0)),           # conv1 matrix
            pl.BlockSpec((1, D_A1), lambda b: (0, 0)),              # conv1 bias
            pl.BlockSpec((D_POOL_PAD, N_FLAT), lambda b: (0, 0)),   # conv2 matrix
            pl.BlockSpec((1, N_FLAT), lambda b: (0, 0)),            # conv2 bias
            pl.BlockSpec((N_FLAT, LANE), lambda b: (0, 0)),         # fc1 weight
            pl.BlockSpec((1, LANE), lambda b: (0, 0)),              # fc1 bias
            pl.BlockSpec((LANE, LANE), lambda b: (0, 0)),           # fc2 weight
            pl.BlockSpec((1, LANE), lambda b: (0, 0)),              # fc2 bias
        ],
        out_specs=pl.BlockSpec((nb, LANE), lambda b: (b, 0)),
        compiler_params=pltpu.CompilerParams(
            dimension_semantics=("parallel",),
            vmem_limit_bytes=32 * 1024 * 1024),
    )(x2, W1m, B1m, W2m, B2m, FW1, FB1, FW2, FB2)

    return out[:N, :num_classes]


# ----------------------------- reference (JAX, f32) --------------------------

def reference_forward(x, params):
    w1, b1, w2, b2, fw1, fb1, fw2, fb2 = params
    dn = ("NCHW", "OIHW", "NCHW")
    y = lax.conv_general_dilated(x, w1, (1, 1), "VALID", dimension_numbers=dn)
    y = jnp.maximum(y + b1[None, :, None, None], 0.0)
    y = lax.reduce_window(y, -jnp.inf, lax.max, (1, 1, 2, 2), (1, 1, 2, 2), "VALID")
    y = lax.conv_general_dilated(y, w2, (1, 1), "VALID", dimension_numbers=dn)
    y = jnp.maximum(y + b2[None, :, None, None], 0.0)
    y = y.reshape(y.shape[0], -1)
    y = jnp.maximum(y @ fw1.T + fb1, 0.0)
    return y @ fw2.T + fb2


# ----------------------------------- main ------------------------------------

if __name__ == "__main__":
    num_classes = 5
    N = 2

    # deterministic example input, NCHW (28x10 gives fc1 in_features = 352)
    x = jax.random.normal(jax.random.PRNGKey(0), (N, 1, H_IN, W_IN), dtype=jnp.float32)

    # deterministic parameter init (PyTorch-default-style uniform)
    pkeys = jax.random.split(jax.random.PRNGKey(42), 8)

    def uinit(k, shape, fan_in):
        bound = 1.0 / np.sqrt(fan_in)
        return jax.random.uniform(k, shape, jnp.float32, -bound, bound)

    w1 = uinit(pkeys[0], (6, 1, 5, 5), 25)
    b1 = uinit(pkeys[1], (6,), 25)
    w2 = uinit(pkeys[2], (16, 6, 2, 2), 24)
    b2 = uinit(pkeys[3], (16,), 24)
    fw1 = uinit(pkeys[4], (120, 352), 352)
    fb1 = uinit(pkeys[5], (120,), 352)
    fw2 = uinit(pkeys[6], (num_classes, 120), 120)
    fb2 = uinit(pkeys[7], (num_classes,), 120)
    params = (w1, b1, w2, b2, fw1, fb1, fw2, fb2)

    kparams = prepare_params(params)   # weight pre-lowering, once, outside jit
    fwd = jax.jit(functools.partial(cnn_forward, num_classes=num_classes))

    out = jax.block_until_ready(fwd(x, kparams))
    assert out.shape == (N, num_classes)

    ref = reference_forward(x, params)
    err = float(np.max(np.abs(np.asarray(out) - np.asarray(ref))))
    if not np.allclose(np.asarray(out), np.asarray(ref), atol=1e-2, rtol=1e-2):
        raise AssertionError(f"Pallas output mismatch, max abs diff = {err}")

    print("KERNEL_OK")
</pallas_src>

<mosaic_0001>
module attributes {stable_mosaic.version = 11 : i64} {
  func.func @_cnn_fused_kernel(%arg0: i32, %arg1: memref<16x280xbf16, #tpu.memory_space<vmem>>, %arg2: memref<280x1024xbf16, #tpu.memory_space<vmem>>, %arg3: memref<1x1024xf32, #tpu.memory_space<vmem>>, %arg4: memref<256x352xbf16, #tpu.memory_space<vmem>>, %arg5: memref<1x352xf32, #tpu.memory_space<vmem>>, %arg6: memref<352x128xbf16, #tpu.memory_space<vmem>>, %arg7: memref<1x128xf32, #tpu.memory_space<vmem>>, %arg8: memref<128x128xbf16, #tpu.memory_space<vmem>>, %arg9: memref<1x128xf32, #tpu.memory_space<vmem>>, %arg10: memref<16x128xf32, #tpu.memory_space<vmem>>) attributes {dimension_semantics = [#tpu.dimension_semantics<parallel>], iteration_bounds = array<i64: 1>, scalar_prefetch = 0 : i64, scratch_operands = 0 : i64, tpu.core_type = #tpu.core_type<tc>, window_params = [{transform_indices = @transform_0, window_bounds = array<i64: 16, 280>}, {pipeline_mode = #tpu.pipeline_mode<synchronous>, transform_indices = @transform_1, window_bounds = array<i64: 280, 1024>}, {pipeline_mode = #tpu.pipeline_mode<synchronous>, transform_indices = @transform_2, window_bounds = array<i64: 1, 1024>}, {pipeline_mode = #tpu.pipeline_mode<synchronous>, transform_indices = @transform_3, window_bounds = array<i64: 256, 352>}, {pipeline_mode = #tpu.pipeline_mode<synchronous>, transform_indices = @transform_4, window_bounds = array<i64: 1, 352>}, {pipeline_mode = #tpu.pipeline_mode<synchronous>, transform_indices = @transform_5, window_bounds = array<i64: 352, 128>}, {pipeline_mode = #tpu.pipeline_mode<synchronous>, transform_indices = @transform_6, window_bounds = array<i64: 1, 128>}, {pipeline_mode = #tpu.pipeline_mode<synchronous>, transform_indices = @transform_7, window_bounds = array<i64: 128, 128>}, {pipeline_mode = #tpu.pipeline_mode<synchronous>, transform_indices = @transform_8, window_bounds = array<i64: 1, 128>}, {transform_indices = @transform_9, window_bounds = array<i64: 16, 128>}]} {
    %c0 = arith.constant 0 : index
    %c0_0 = arith.constant 0 : index
    %0 = vector.load %arg1[%c0, %c0_0] : memref<16x280xbf16, #tpu.memory_space<vmem>>, vector<16x280xbf16>
    %c0_1 = arith.constant 0 : index
    %c0_2 = arith.constant 0 : index
    %1 = vector.load %arg2[%c0_1, %c0_2] : memref<280x1024xbf16, #tpu.memory_space<vmem>>, vector<280x1024xbf16>
    %cst = arith.constant dense<0.000000e+00> : vector<16x1024xf32>
    %2 = tpu.matmul %0, %1, %cst {dimension_numbers = #tpu.dot_dimension_numbers<[1], [0], [0], [1], [0, 0, 1, 1], [], []>} : vector<16x280xbf16>, vector<280x1024xbf16>, vector<16x1024xf32> -> vector<16x1024xf32>
    %c0_3 = arith.constant 0 : index
    %c0_4 = arith.constant 0 : index
    %3 = vector.load %arg3[%c0_3, %c0_4] : memref<1x1024xf32, #tpu.memory_space<vmem>>, vector<1x1024xf32>
    %4 = vector.broadcast %3 : vector<1x1024xf32> to vector<16x1024xf32>
    %5 = arith.addf %2, %4 : vector<16x1024xf32>
    %cst_5 = arith.constant 0.000000e+00 : f32
    %6 = vector.broadcast %cst_5 : f32 to vector<16x1024xf32>
    %7 = arith.maximumf %5, %6 : vector<16x1024xf32>
    %8 = vector.extract_strided_slice %7 {offsets = [0, 0], sizes = [16, 256], strides = [1, 1]} : vector<16x1024xf32> to vector<16x256xf32>
    %9 = vector.extract_strided_slice %7 {offsets = [0, 256], sizes = [16, 256], strides = [1, 1]} : vector<16x1024xf32> to vector<16x256xf32>
    %10 = arith.maximumf %8, %9 : vector<16x256xf32>
    %11 = vector.extract_strided_slice %7 {offsets = [0, 512], sizes = [16, 256], strides = [1, 1]} : vector<16x1024xf32> to vector<16x256xf32>
    %12 = vector.extract_strided_slice %7 {offsets = [0, 768], sizes = [16, 256], strides = [1, 1]} : vector<16x1024xf32> to vector<16x256xf32>
    %13 = arith.maximumf %11, %12 : vector<16x256xf32>
    %14 = arith.maximumf %10, %13 : vector<16x256xf32>
    %15 = arith.truncf %14 : vector<16x256xf32> to vector<16x256xbf16>
    %c0_6 = arith.constant 0 : index
    %c0_7 = arith.constant 0 : index
    %16 = vector.load %arg4[%c0_6, %c0_7] : memref<256x352xbf16, #tpu.memory_space<vmem>>, vector<256x352xbf16>
    %cst_8 = arith.constant dense<0.000000e+00> : vector<16x352xf32>
    %17 = tpu.matmul %15, %16, %cst_8 {dimension_numbers = #tpu.dot_dimension_numbers<[1], [0], [0], [1], [0, 0, 1, 1], [], []>} : vector<16x256xbf16>, vector<256x352xbf16>, vector<16x352xf32> -> vector<16x352xf32>
    %c0_9 = arith.constant 0 : index
    %c0_10 = arith.constant 0 : index
    %18 = vector.load %arg5[%c0_9, %c0_10] : memref<1x352xf32, #tpu.memory_space<vmem>>, vector<1x352xf32>
    %19 = vector.broadcast %18 : vector<1x352xf32> to vector<16x352xf32>
    %20 = arith.addf %17, %19 : vector<16x352xf32>
    %cst_11 = arith.constant 0.000000e+00 : f32
    %21 = vector.broadcast %cst_11 : f32 to vector<16x352xf32>
    %22 = arith.maximumf %20, %21 : vector<16x352xf32>
    %23 = arith.truncf %22 : vector<16x352xf32> to vector<16x352xbf16>
    %c0_12 = arith.constant 0 : index
    %c0_13 = arith.constant 0 : index
    %24 = vector.load %arg6[%c0_12, %c0_13] : memref<352x128xbf16, #tpu.memory_space<vmem>>, vector<352x128xbf16>
    %cst_14 = arith.constant dense<0.000000e+00> : vector<16x128xf32>
    %25 = tpu.matmul %23, %24, %cst_14 {dimension_numbers = #tpu.dot_dimension_numbers<[1], [0], [0], [1], [0, 0, 1, 1], [], []>} : vector<16x352xbf16>, vector<352x128xbf16>, vector<16x128xf32> -> vector<16x128xf32>
    %c0_15 = arith.constant 0 : index
    %c0_16 = arith.constant 0 : index
    %26 = vector.load %arg7[%c0_15, %c0_16] : memref<1x128xf32, #tpu.memory_space<vmem>>, vector<1x128xf32>
    %27 = vector.broadcast %26 : vector<1x128xf32> to vector<16x128xf32>
    %28 = arith.addf %25, %27 : vector<16x128xf32>
    %cst_17 = arith.constant 0.000000e+00 : f32
    %29 = vector.broadcast %cst_17 : f32 to vector<16x128xf32>
    %30 = arith.maximumf %28, %29 : vector<16x128xf32>
    %31 = arith.truncf %30 : vector<16x128xf32> to vector<16x128xbf16>
    %c0_18 = arith.constant 0 : index
    %c0_19 = arith.constant 0 : index
    %32 = vector.load %arg8[%c0_18, %c0_19] : memref<128x128xbf16, #tpu.memory_space<vmem>>, vector<128x128xbf16>
    %cst_20 = arith.constant dense<0.000000e+00> : vector<16x128xf32>
    %33 = tpu.matmul %31, %32, %cst_20 {dimension_numbers = #tpu.dot_dimension_numbers<[1], [0], [0], [1], [0, 0, 1, 1], [], []>} : vector<16x128xbf16>, vector<128x128xbf16>, vector<16x128xf32> -> vector<16x128xf32>
    %c0_21 = arith.constant 0 : index
    %c0_22 = arith.constant 0 : index
    %34 = vector.load %arg9[%c0_21, %c0_22] : memref<1x128xf32, #tpu.memory_space<vmem>>, vector<1x128xf32>
    %35 = vector.broadcast %34 : vector<1x128xf32> to vector<16x128xf32>
    %36 = arith.addf %33, %35 : vector<16x128xf32>
    %c0_23 = arith.constant 0 : index
    %c0_24 = arith.constant 0 : index
    %37 = vector.load %arg10[%c0_23, %c0_24] : memref<16x128xf32, #tpu.memory_space<vmem>>, vector<16x128xf32>
    tpu.vector_store %arg10[%c0_23, %c0_24], %36 {strides = array<i32>} : memref<16x128xf32, #tpu.memory_space<vmem>>, vector<16x128xf32>,
    return
  }
  func.func @transform_0(%arg0: i32) -> (i32, i32) {
    %c0_i32 = arith.constant 0 : i32
    %c0_i32_0 = arith.constant 0 : i32
    return %arg0, %c0_i32 : i32, i32
  }
  func.func @transform_1(%arg0: i32) -> (i32, i32) {
    %c0_i32 = arith.constant 0 : i32
    %c0_i32_0 = arith.constant 0 : i32
    %c0_i32_1 = arith.constant 0 : i32
    return %c0_i32, %c0_i32_0 : i32, i32
  }
  func.func @transform_2(%arg0: i32) -> (i32, i32) {
    %c0_i32 = arith.constant 0 : i32
    %c0_i32_0 = arith.constant 0 : i32
    %c0_i32_1 = arith.constant 0 : i32
    return %c0_i32, %c0_i32_0 : i32, i32
  }
  func.func @transform_3(%arg0: i32) -> (i32, i32) {
    %c0_i32 = arith.constant 0 : i32
    %c0_i32_0 = arith.constant 0 : i32
    %c0_i32_1 = arith.constant 0 : i32
    return %c0_i32, %c0_i32_0 : i32, i32
  }
  func.func @transform_4(%arg0: i32) -> (i32, i32) {
    %c0_i32 = arith.constant 0 : i32
    %c0_i32_0 = arith.constant 0 : i32
    %c0_i32_1 = arith.constant 0 : i32
    return %c0_i32, %c0_i32_0 : i32, i32
  }
  func.func @transform_5(%arg0: i32) -> (i32, i32) {
    %c0_i32 = arith.constant 0 : i32
    %c0_i32_0 = arith.constant 0 : i32
    %c0_i32_1 = arith.constant 0 : i32
    return %c0_i32, %c0_i32_0 : i32, i32
  }
  func.func @transform_6(%arg0: i32) -> (i32, i32) {
    %c0_i32 = arith.constant 0 : i32
    %c0_i32_0 = arith.constant 0 : i32
    %c0_i32_1 = arith.constant 0 : i32
    return %c0_i32, %c0_i32_0 : i32, i32
  }
  func.func @transform_7(%arg0: i32) -> (i32, i32) {
    %c0_i32 = arith.constant 0 : i32
    %c0_i32_0 = arith.constant 0 : i32
    %c0_i32_1 = arith.constant 0 : i32
    return %c0_i32, %c0_i32_0 : i32, i32
  }
  func.func @transform_8(%arg0: i32) -> (i32, i32) {
    %c0_i32 = arith.constant 0 : i32
    %c0_i32_0 = arith.constant 0 : i32
    %c0_i32_1 = arith.constant 0 : i32
    return %c0_i32, %c0_i32_0 : i32, i32
  }
  func.func @transform_9(%arg0: i32) -> (i32, i32) {
    %c0_i32 = arith.constant 0 : i32
    %c0_i32_0 = arith.constant 0 : i32
    return %arg0, %c0_i32 : i32, i32
  }
}

</mosaic_0001>

<bundles_post_ra>
// kernel: cnn_forward.1
= control target key start
LH: loop header
LB: loop body
LE: loop exit
PB: predicated region body
PF: predicated region fallthrough
CT: control target
= control target key end

     0   :  { %14 = vsyncpa [#allocation3], 0  ;;  %s2672_s30 = smov [#allocation2]   ;;  %s3075_s0 = inlined_call_operand.vmem [shape: bf16[16,280], index: 0, kind: input, shape index: {}]   ;;  %s3076_s1 = inlined_call_operand.hbm [shape: bf16[280,1024], index: 1, kind: input, shape index: {}]   ;;  %s3077_s2 = inlined_call_operand.vmem [shape: f32[1,1024], index: 2, kind: input, shape index: {}]   ;;  %s3078_s3 = inlined_call_operand.vmem [shape: bf16[256,352], index: 3, kind: input, shape index: {}]   ;;  %s3079_s4 = inlined_call_operand.vmem [shape: f32[1,352], index: 4, kind: input, shape index: {}]   ;;  %s3080_s5 = inlined_call_operand.vmem [shape: bf16[352,128], index: 5, kind: input, shape index: {}]   ;;  %s3081_s6 = inlined_call_operand.vmem [shape: f32[1,128], index: 6, kind: input, shape index: {}]   ;;  %s3082_s7 = inlined_call_operand.vmem [shape: bf16[128,128], index: 7, kind: input, shape index: {}]   ;;  %s3083_s8 = inlined_call_operand.vmem [shape: f32[1,128], index: 8, kind: input, shape index: {}]   ;;  %s3084_s9 = inlined_call_operand.vmem [shape: f32[16,128], index: 9, kind: output, shape index: {}]  }
   0x1   :  { %s22_s10 = sshll.u32 %s2672_s30, 4  ;;  %s2648_s13 = scalar_lea.hbm %s3076_s1, 17920  ;;  %s23_s10 = int_to_ptr.vmem [resolvable:$true] %s22_s10 }
   0x2   :  { %p2649_p0 = scmp.ne.s32.totalorder %s3076_s1, %s2648_s13  ;;  %p2652_p1 = scmp.lt.u32.totalorder %s2648_s13, %s3076_s1 }
   0x4   :  { %p2654_p2 = pnand %p2652_p1, %p2649_p0 }
   0x6   :  { %2657 = shalt.err (!%p2654_p2)
}
   0x7   :  { %s2658_s18 = scalar_lea.vmem %s23_s10, 17920  ;;  %p2663_p4 = scmp.lt.s32.totalorder %s23_s10, %s23_s10 }
   0x8   :  { %p2659_p3 = scmp.ne.s32.totalorder %s23_s10, %s2658_s18  ;;  %p2664_p5 = scmp.lt.s32.totalorder %s2658_s18, %s2658_s18 }
   0xa   :  { %p2665_p6 = por %p2664_p5, %p2663_p4 }
   0xc   :  { %p2666_p7 = pnand %p2665_p6, %p2659_p3 }
   0xe   :  { %2669 = shalt.err (!%p2666_p7)
}
   0xf   :  { %s2673_s19 = smov 512   ;;  %s2674_s20 = smov 32  }
  0x10   :  { %28 = dma.hbm_to_vmem [thread:$0]  %s3076_s1, 17920, %s23_s10, [#allocation3], %s2673_s19, %s2673_s19, %s2674_s20  }
  0x11   :  { %2670 = dma.done.wait [#allocation3], 17920  }
  0x12   :  { %2671 = vsyncadd [#allocation3], 4294949376  ;;  %v51_v0 = vld [vmem:[#allocation2] sm:$0xff]  ;;  %v52_v2 = vld [vmem:[#allocation2 + $0x8] sm:$0xff]  ;;  %vm952_vm0 = vcmask 1043456   ;;  %vm948_vm1 = vcmask 195584  }
  0x13   :  { %v55_v1 = vld [vmem:[#allocation2 + $0x20] sm:$0xff]  ;;  %v56_v4 = vld [vmem:[#allocation2 + $0x28] sm:$0xff]  ;;  %vm2677_vm2 = vmmov 0   ;;  %vm1964_vm3 = vcmask 785408  }
  0x14   :  { %v2176_v3 = vcombine.high %v51_v0, %v55_v1  ;;  %v2175_v5 = vcombine.low %v51_v0, %v55_v1  ;;  %v59_v6 = vld [vmem:[#allocation2 + $0x40] sm:$0xff]  ;;  %v2178_v8 = vcombine.high %v52_v2, %v56_v4  ;;  %v2177_v9 = vcombine.low %v52_v2, %v56_v4  ;;  %v60_v11 = vld [vmem:[#allocation2 + $0x48] sm:$0xff] }
  0x15   :  { %v63_v7 = vld [vmem:[#allocation2 + $0x60] sm:$0xff]  ;;  %v64_v12 = vld [vmem:[#allocation2 + $0x68] sm:$0xff] }
  0x16   :  { %v2184_v10 = vcombine.high %v59_v6, %v63_v7  ;;  %v67_v13 = vld [vmem:[#allocation2 + $0x80] sm:$0xff]  ;;  %977 = vmatprep.subr.bf16.mxu0 %v2176_v3  ;;  %v2186_v14 = vcombine.high %v60_v11, %v64_v12  ;;  %v68_v16 = vld [vmem:[#allocation2 + $0x88] sm:$0xff]  ;;  %1063 = vmatprep.subr.bf16.mxu1 %v2178_v8  ;;  %v2183_v18 = vcombine.low %v59_v6, %v63_v7 }
  0x17   :  { %v71_v15 = vld [vmem:[#allocation2 + $0xa0] sm:$0xff]  ;;  %v72_v17 = vld [vmem:[#allocation2 + $0xa8] sm:$0xff]  ;;  %978 = vmatpush1.bf16.msra.mxu0 %v2175_v5  ;;  %1064 = vmatpush1.bf16.msra.mxu1 %v2177_v9  ;;  %v2185_v19 = vcombine.low %v60_v11, %v64_v12 }
  0x18   :  { %979 = vmatprep.subr.bf16.mxu0 %v2184_v10  ;;  %v2192_v20 = vcombine.high %v67_v13, %v71_v15  ;;  %1065 = vmatprep.subr.bf16.mxu1 %v2186_v14  ;;  %v2194_v21 = vcombine.high %v68_v16, %v72_v17  ;;  %v75_v22 = vld [vmem:[#allocation2 + $0xc0] sm:$0xff]  ;;  %v76_v24 = vld [vmem:[#allocation2 + $0xc8] sm:$0xff]  ;;  %v2191_v26 = vcombine.low %v67_v13, %v71_v15 }
  0x19   :  { %v79_v23 = vld [vmem:[#allocation2 + $0xe0] sm:$0xff]  ;;  %v80_v25 = vld [vmem:[#allocation2 + $0xe8] sm:$0xff]  ;;  %v2193_v27 = vcombine.low %v68_v16, %v72_v17 }
  0x1a   :  { %v2200_v28 = vcombine.high %v75_v22, %v79_v23  ;;  %v2202_v29 = vcombine.high %v76_v24, %v80_v25  ;;  %v83_v30 = vld [vmem:[#allocation2 + $0x100] sm:$0xff]  ;;  %v84_v32 = vld [vmem:[#allocation2 + $0x108] sm:$0xff]  ;;  %v2199_v34 = vcombine.low %v75_v22, %v79_v23  ;;  %v2201_v35 = vcombine.low %v76_v24, %v80_v25 }
  0x1b   :  { %980 = vmatpush1.bf16.msra.mxu0 %v2183_v18  ;;  %1066 = vmatpush1.bf16.msra.mxu1 %v2185_v19  ;;  %v87_v31 = vld [vmem:[#allocation2 + $0x120] sm:$0xff]  ;;  %v88_v33 = vld [vmem:[#allocation2 + $0x128] sm:$0xff] }
  0x1c   :  { %981 = vmatprep.subr.bf16.mxu0 %v2192_v20  ;;  %1067 = vmatprep.subr.bf16.mxu1 %v2194_v21  ;;  %v2208_v36 = vcombine.high %v83_v30, %v87_v31  ;;  %v2210_v37 = vcombine.high %v84_v32, %v88_v33  ;;  %v91_v38 = vld [vmem:[#allocation2 + $0x140] sm:$0xff]  ;;  %v92_v40 = vld [vmem:[#allocation2 + $0x148] sm:$0xff]  ;;  %v2207_v42 = vcombine.low %v83_v30, %v87_v31 }
  0x1d   :  { %v95_v39 = vld [vmem:[#allocation2 + $0x160] sm:$0xff]  ;;  %v96_v41 = vld [vmem:[#allocation2 + $0x168] sm:$0xff]  ;;  %v2209_v43 = vcombine.low %v84_v32, %v88_v33 }
  0x1e   :  { %v2216_v44 = vcombine.high %v91_v38, %v95_v39  ;;  %v2218_v45 = vcombine.high %v92_v40, %v96_v41  ;;  %v99_v46 = vld [vmem:[#allocation2 + $0x180] sm:$0xff]  ;;  %v100_v48 = vld [vmem:[#allocation2 + $0x188] sm:$0xff]  ;;  %v2215_v50 = vcombine.low %v91_v38, %v95_v39  ;;  %v2217_v51 = vcombine.low %v92_v40, %v96_v41 }
  0x1f   :  { %982 = vmatpush1.bf16.msra.mxu0 %v2191_v26  ;;  %1068 = vmatpush1.bf16.msra.mxu1 %v2193_v27  ;;  %v103_v47 = vld [vmem:[#allocation2 + $0x1a0] sm:$0xff]  ;;  %v104_v49 = vld [vmem:[#allocation2 + $0x1a8] sm:$0xff] }
  0x20   :  { %983 = vmatprep.subr.bf16.mxu0 %v2200_v28  ;;  %1069 = vmatprep.subr.bf16.mxu1 %v2202_v29  ;;  %v2224_v52 = vcombine.high %v99_v46, %v103_v47  ;;  %v2226_v53 = vcombine.high %v100_v48, %v104_v49  ;;  %v107_v54 = vld [vmem:[#allocation2 + $0x1c0] sm:$0xff]  ;;  %v108_v57 = vld [vmem:[#allocation2 + $0x1c8] sm:$0xff]  ;;  %v2223_v59 = vcombine.low %v99_v46, %v103_v47 }
  0x21   :  { %v111_v55 = vld [vmem:[#allocation2 + $0x1e0] sm:$0xff]  ;;  %v112_v58 = vld [vmem:[#allocation2 + $0x1e8] sm:$0xff]  ;;  %v2225_v60 = vcombine.low %v100_v48, %v104_v49 }
  0x22   :  { %v2743_v56 = vld [vmem:[%s3075_s0 + $0x4] ss:$12 sps:$4 sm:$0xff]   ;;  %v2232_v61 = vcombine.high %v107_v54, %v111_v55  ;;  %v2234_v63 = vcombine.high %v108_v57, %v112_v58  ;;  %v116_v1 = vld [vmem:[#allocation2 + $0x208] sm:$0xff]  ;;  %v2231_v3 = vcombine.low %v107_v54, %v111_v55  ;;  %v2233_v4 = vcombine.low %v108_v57, %v112_v58 }
  0x23   :  { %984 = vmatpush1.bf16.msra.mxu0 %v2199_v34  ;;  %1070 = vmatpush1.bf16.msra.mxu1 %v2201_v35  ;;  %v115_v62 = vld [vmem:[#allocation2 + $0x200] sm:$0xff]  ;;  %v120_v2 = vld [vmem:[#allocation2 + $0x228] sm:$0xff] }
  0x24   :  { %985 = vmatprep.subr.bf16.mxu0 %v2208_v36  ;;  %1071 = vmatprep.subr.bf16.mxu1 %v2210_v37  ;;  %v119_v0 = vld [vmem:[#allocation2 + $0x220] sm:$0xff]  ;;  %v2242_v6 = vcombine.high %v116_v1, %v120_v2  ;;  %v124_v9 = vld [vmem:[#allocation2 + $0x248] sm:$0xff]  ;;  %v2241_v12 = vcombine.low %v116_v1, %v120_v2 }
  0x25   :  { %1009 = vmatprep.mubr.bf16.mxu0 %v2743_v56  ;;  %1095 = vmatprep.mubr.bf16.mxu1 %v2743_v56  ;;  %v2240_v5 = vcombine.high %v115_v62, %v119_v0  ;;  %v123_v7 = vld [vmem:[#allocation2 + $0x240] sm:$0xff]  ;;  %v128_v10 = vld [vmem:[#allocation2 + $0x268] sm:$0xff]  ;;  %v2239_v11 = vcombine.low %v115_v62, %v119_v0 }
  0x26   :  { %v127_v8 = vld [vmem:[#allocation2 + $0x260] sm:$0xff]  ;;  %v2250_v14 = vcombine.high %v124_v9, %v128_v10  ;;  %v132_v17 = vld [vmem:[#allocation2 + $0x288] sm:$0xff]  ;;  %v2249_v20 = vcombine.low %v124_v9, %v128_v10 }
  0x27   :  { %986 = vmatpush1.bf16.msra.mxu0 %v2207_v42  ;;  %1072 = vmatpush1.bf16.msra.mxu1 %v2209_v43  ;;  %v2248_v13 = vcombine.high %v123_v7, %v127_v8  ;;  %v131_v15 = vld [vmem:[#allocation2 + $0x280] sm:$0xff]  ;;  %v136_v18 = vld [vmem:[#allocation2 + $0x2a8] sm:$0xff]  ;;  %v2247_v19 = vcombine.low %v123_v7, %v127_v8 }
  0x28   :  { %987 = vmatprep.subr.bf16.mxu0 %v2216_v44  ;;  %1073 = vmatprep.subr.bf16.mxu1 %v2218_v45  ;;  %v135_v16 = vld [vmem:[#allocation2 + $0x2a0] sm:$0xff]  ;;  %v2258_v22 = vcombine.high %v132_v17, %v136_v18  ;;  %v140_v25 = vld [vmem:[#allocation2 + $0x2c8] sm:$0xff]  ;;  %v2257_v28 = vcombine.low %v132_v17, %v136_v18  ;;  %v54_v18 = vld [vmem:[#allocation2 + $0x18] sm:$0xff] }
  0x29   :  { %v2256_v21 = vcombine.high %v131_v15, %v135_v16  ;;  %v139_v23 = vld [vmem:[#allocation2 + $0x2c0] sm:$0xff]  ;;  %v144_v26 = vld [vmem:[#allocation2 + $0x2e8] sm:$0xff]  ;;  %v2255_v27 = vcombine.low %v131_v15, %v135_v16 }
  0x2a   :  { %v143_v24 = vld [vmem:[#allocation2 + $0x2e0] sm:$0xff]  ;;  %v2266_v30 = vcombine.high %v140_v25, %v144_v26  ;;  %v148_v33 = vld [vmem:[#allocation2 + $0x308] sm:$0xff]  ;;  %v2265_v36 = vcombine.low %v140_v25, %v144_v26  ;;  %v61_v26 = vld [vmem:[#allocation2 + $0x50] sm:$0xff] }
  0x2b   :  { %988 = vmatpush1.bf16.msra.mxu0 %v2215_v50  ;;  %1074 = vmatpush1.bf16.msra.mxu1 %v2217_v51  ;;  %v2264_v29 = vcombine.high %v139_v23, %v143_v24  ;;  %v147_v31 = vld [vmem:[#allocation2 + $0x300] sm:$0xff]  ;;  %v152_v34 = vld [vmem:[#allocation2 + $0x328] sm:$0xff]  ;;  %v2263_v35 = vcombine.low %v139_v23, %v143_v24  ;;  %v2675_v24 = vmov 0  }
  0x2c   :  { %989 = vmatprep.subr.bf16.mxu0 %v2224_v52  ;;  %1075 = vmatprep.subr.bf16.mxu1 %v2226_v53  ;;  %v151_v32 = vld [vmem:[#allocation2 + $0x320] sm:$0xff]  ;;  %v2274_v38 = vcombine.high %v148_v33, %v152_v34  ;;  %v156_v41 = vld [vmem:[#allocation2 + $0x348] sm:$0xff]  ;;  %v2273_v46 = vcombine.low %v148_v33, %v152_v34  ;;  %v73_v33 = vld [vmem:[#allocation2 + $0xb0] sm:$0xff] }
  0x2d   :  { %v2272_v37 = vcombine.high %v147_v31, %v151_v32  ;;  %v155_v39 = vld [vmem:[#allocation2 + $0x340] sm:$0xff]  ;;  %v160_v42 = vld [vmem:[#allocation2 + $0x368] sm:$0xff]  ;;  %v2271_v43 = vcombine.low %v147_v31, %v151_v32  ;;  %v69_v32 = vld [vmem:[#allocation2 + $0x90] sm:$0xff] }
  0x2e   :  { %v159_v40 = vld [vmem:[#allocation2 + $0x360] sm:$0xff]  ;;  %v164_v48 = vld [vmem:[#allocation2 + $0x388] sm:$0xff]  ;;  %v2282_v50 = vcombine.high %v156_v41, %v160_v42  ;;  %v2281_v54 = vcombine.low %v156_v41, %v160_v42  ;;  %v81_v41 = vld [vmem:[#allocation2 + $0xf0] sm:$0xff] }
  0x2f   :  { %990 = vmatpush1.bf16.msra.mxu0 %v2223_v59  ;;  %1076 = vmatpush1.bf16.msra.mxu1 %v2225_v60  ;;  %v163_v44 = vld [vmem:[#allocation2 + $0x380] sm:$0xff]  ;;  %v2280_v47 = vcombine.high %v155_v39, %v159_v40  ;;  %v168_v49 = vld [vmem:[#allocation2 + $0x3a8] sm:$0xff]  ;;  %v2279_v51 = vcombine.low %v155_v39, %v159_v40  ;;  %v77_v40 = vld [vmem:[#allocation2 + $0xd0] sm:$0xff] }
  0x30   :  { %991 = vmatprep.subr.bf16.mxu0 %v2232_v61  ;;  %1077 = vmatprep.subr.bf16.mxu1 %v2234_v63  ;;  %v167_v45 = vld [vmem:[#allocation2 + $0x3a0] sm:$0xff]  ;;  %v172_v57 = vld [vmem:[#allocation2 + $0x3c8] sm:$0xff]  ;;  %v2290_v59 = vcombine.high %v164_v48, %v168_v49  ;;  %v2289_v63 = vcombine.low %v164_v48, %v168_v49  ;;  %v85_v48 = vld [vmem:[#allocation2 + $0x110] sm:$0xff] }
  0x31   :  { %v171_v52 = vld [vmem:[#allocation2 + $0x3c0] sm:$0xff]  ;;  %v2288_v55 = vcombine.high %v163_v44, %v167_v45  ;;  %v176_v58 = vld [vmem:[#allocation2 + $0x3e8] sm:$0xff]  ;;  %v2287_v60 = vcombine.low %v163_v44, %v167_v45  ;;  %v78_v44 = vld [vmem:[#allocation2 + $0xd8] sm:$0xff] }
  0x32   :  { %v175_v53 = vld [vmem:[#allocation2 + $0x3e0] sm:$0xff]  ;;  %v180_v1 = vld [vmem:[#allocation2 + $0x408] sm:$0xff]  ;;  %v2297_v7 = vcombine.low %v172_v57, %v176_v58  ;;  %v82_v45 = vld [vmem:[#allocation2 + $0xf8] sm:$0xff] }
  0x33   :  { %992 = vmatpush1.bf16.msra.mxu0 %v2231_v3  ;;  %1078 = vmatpush1.bf16.msra.mxu1 %v2233_v4  ;;  %v179_v61 = vld [vmem:[#allocation2 + $0x400] sm:$0xff]  ;;  %v2296_v0 = vcombine.high %v171_v52, %v175_v53  ;;  %v184_v2 = vld [vmem:[#allocation2 + $0x428] sm:$0xff]  ;;  %v2298_v3 = vcombine.high %v172_v57, %v176_v58  ;;  %v89_v49 = vld [vmem:[#allocation2 + $0x130] sm:$0xff]  ;;  %v2205_v58 = vcombine.low %v78_v44, %v82_v45 }
  0x34   :  { %993 = vmatprep.subr.bf16.mxu0 %v2240_v5  ;;  %1079 = vmatprep.subr.bf16.mxu1 %v2242_v6  ;;  %v183_v62 = vld [vmem:[#allocation2 + $0x420] sm:$0xff]  ;;  %v2295_v5 = vcombine.low %v171_v52, %v175_v53  ;;  %v188_v6 = vld [vmem:[#allocation2 + $0x448] sm:$0xff]  ;;  %v2306_v10 = vcombine.high %v180_v1, %v184_v2  ;;  %v2305_v15 = vcombine.low %v180_v1, %v184_v2  ;;  %v86_v52 = vld [vmem:[#allocation2 + $0x118] sm:$0xff] }
  0x35   :  { %v187_v4 = vld [vmem:[#allocation2 + $0x440] sm:$0xff]  ;;  %v2304_v9 = vcombine.high %v179_v61, %v183_v62  ;;  %v2313_v17 = vcombine.low %v188_v6, %v188_v6  ;;  %v90_v53 = vld [vmem:[#allocation2 + $0x138] sm:$0xff]  ;;  %v93_v57 = vld [vmem:[#allocation2 + $0x150] sm:$0xff] }
  0x36   :  { %v2750_v8 = vld [vmem:[%s3075_s0] ss:$12 sps:$4 sm:$0xff]   ;;  %v2312_v16 = vcombine.high %v187_v4, %v187_v4 }
  0x37   :  { %994 = vmatpush1.bf16.msra.mxu0 %v2239_v11  ;;  %1080 = vmatpush1.bf16.msra.mxu1 %v2241_v12  ;;  %v2303_v11 = vcombine.low %v179_v61, %v183_v62  ;;  %v2311_v12 = vcombine.low %v187_v4, %v187_v4  ;;  %v94_v61 = vld [vmem:[#allocation2 + $0x158] sm:$0xff]  ;;  %v105_v4 = vld [vmem:[#allocation2 + $0x1b0] sm:$0xff] }
  0x38   :  { %995 = vmatprep.subr.bf16.mxu0 %v2248_v13  ;;  %1081 = vmatprep.subr.bf16.mxu1 %v2250_v14  ;;  %v53_v13 = vld [vmem:[#allocation2 + $0x10] sm:$0xff]  ;;  %v98_v62 = vld [vmem:[#allocation2 + $0x178] sm:$0xff] }
  0x39   :  { %v57_v14 = vld [vmem:[#allocation2 + $0x30] sm:$0xff]  ;;  %v2222_v2 = vcombine.high %v94_v61, %v98_v62 }
  0x3a   :  { %v2180_v23 = vcombine.high %v53_v13, %v57_v14  ;;  %v2179_v31 = vcombine.low %v53_v13, %v57_v14  ;;  %v113_v13 = vld [vmem:[#allocation2 + $0x1f0] sm:$0xff]  ;;  %v110_v14 = vld [vmem:[#allocation2 + $0x1d8] sm:$0xff] }
  0x3b   :  { %996 = vmatpush1.bf16.msra.mxu0 %v2247_v19  ;;  %1082 = vmatpush1.bf16.msra.mxu1 %v2249_v20  ;;  %v58_v19 = vld [vmem:[#allocation2 + $0x38] sm:$0xff]  ;;  %v2314_v20 = vcombine.high %v188_v6, %v188_v6 }
  0x3c   :  { %997 = vmatprep.subr.bf16.mxu0 %v2256_v21  ;;  %1083 = vmatprep.subr.bf16.mxu1 %v2258_v22  ;;  %v954_v21 = vsel %vm952_vm0, %v2311_v12, 0  ;;  %v960_v22 = vsel %vm952_vm0, %v2313_v17, 0  ;;  %v2182_v25 = vcombine.high %v54_v18, %v58_v19  ;;  %v2181_v34 = vcombine.low %v54_v18, %v58_v19  ;;  %v106_v6 = vld [vmem:[#allocation2 + $0x1b8] sm:$0xff]  ;;  %v109_v12 = vld [vmem:[#allocation2 + $0x1d0] sm:$0xff] }
  0x3d   :  { %v2236_v18 = vcombine.high %v109_v12, %v113_v13 }
  0x3f   :  { %998 = vmatpush1.bf16.msra.mxu0 %v2255_v27  ;;  %1084 = vmatpush1.bf16.msra.mxu1 %v2257_v28  ;;  %v65_v27 = vld [vmem:[#allocation2 + $0x70] sm:$0xff] }
  0x40   :  { %999 = vmatprep.subr.bf16.mxu0 %v2264_v29  ;;  %1085 = vmatprep.subr.bf16.mxu1 %v2266_v30  ;;  %v2763_v28 = vld [vmem:[%s3075_s0 + $0x8] ss:$12 sps:$4 sm:$0xff]   ;;  %v62_v29 = vld [vmem:[#allocation2 + $0x58] sm:$0xff]  ;;  %v2187_v39 = vcombine.low %v61_v26, %v65_v27 }
  0x41   :  { %v66_v30 = vld [vmem:[#allocation2 + $0x78] sm:$0xff] }
  0x42   :  { %v2189_v42 = vcombine.low %v62_v29, %v66_v30 }
  0x43   :  { %1000 = vmatpush1.bf16.msra.mxu0 %v2263_v35  ;;  %1086 = vmatpush1.bf16.msra.mxu1 %v2265_v36  ;;  %v2188_v35 = vcombine.high %v61_v26, %v65_v27  ;;  %v70_v36 = vld [vmem:[#allocation2 + $0x98] sm:$0xff] }
  0x44   :  { %1001 = vmatprep.subr.bf16.mxu0 %v2272_v37  ;;  %1087 = vmatprep.subr.bf16.mxu1 %v2274_v38  ;;  %v74_v37 = vld [vmem:[#allocation2 + $0xb8] sm:$0xff]  ;;  %v2190_v38 = vcombine.high %v62_v29, %v66_v30  ;;  %v125_v30 = vld [vmem:[#allocation2 + $0x250] sm:$0xff] }
  0x47   :  { %1002 = vmatpush1.bf16.msra.mxu0 %v2271_v43  ;;  %1088 = vmatpush1.bf16.msra.mxu1 %v2273_v46  ;;  %v2196_v43 = vcombine.high %v69_v32, %v73_v33  ;;  %v2198_v46 = vcombine.high %v70_v36, %v74_v37 }
  0x48   :  { %1003 = vmatprep.subr.bf16.mxu0 %v2280_v47  ;;  %1089 = vmatprep.subr.bf16.mxu1 %v2282_v50  ;;  %v2195_v47 = vcombine.low %v69_v32, %v73_v33  ;;  %v2197_v50 = vcombine.low %v70_v36, %v74_v37  ;;  %v126_v32 = vld [vmem:[#allocation2 + $0x258] sm:$0xff] }
  0x49   :  { %v130_v33 = vld [vmem:[#allocation2 + $0x278] sm:$0xff] }
  0x4a   :  { %v2254_v37 = vcombine.high %v126_v32, %v130_v33 }
  0x4b   :  { %1004 = vmatpush1.bf16.msra.mxu0 %v2279_v51  ;;  %1090 = vmatpush1.bf16.msra.mxu1 %v2281_v54  ;;  %v2204_v51 = vcombine.high %v77_v40, %v81_v41  ;;  %v2206_v54 = vcombine.high %v78_v44, %v82_v45 }
  0x4c   :  { %1005 = vmatprep.subr.bf16.mxu0 %v2288_v55  ;;  %1091 = vmatprep.subr.bf16.mxu1 %v2290_v59  ;;  %v2203_v55 = vcombine.low %v77_v40, %v81_v41  ;;  %v2212_v59 = vcombine.high %v85_v48, %v89_v49  ;;  %v134_v40 = vld [vmem:[#allocation2 + $0x298] sm:$0xff] }
  0x4d   :  { %v138_v41 = vld [vmem:[#allocation2 + $0x2b8] sm:$0xff] }
  0x4e   :  { %v2262_v45 = vcombine.high %v134_v40, %v138_v41 }
  0x4f   :  { %1006 = vmatpush1.bf16.msra.mxu0 %v2287_v60  ;;  %1092 = vmatpush1.bf16.msra.mxu1 %v2289_v63  ;;  %v97_v60 = vld [vmem:[#allocation2 + $0x170] sm:$0xff]  ;;  %v2211_v63 = vcombine.low %v85_v48, %v89_v49  ;;  %v142_v48 = vld [vmem:[#allocation2 + $0x2d8] sm:$0xff] }
  0x50   :  { %1007 = vmatprep.subr.bf16.mxu0 %v2296_v0  ;;  %1093 = vmatprep.subr.bf16.mxu1 %v2298_v3  ;;  %v2213_v0 = vcombine.low %v86_v52, %v90_v53  ;;  %v2220_v1 = vcombine.high %v93_v57, %v97_v60  ;;  %v101_v3 = vld [vmem:[#allocation2 + $0x190] sm:$0xff]  ;;  %v146_v49 = vld [vmem:[#allocation2 + $0x2f8] sm:$0xff] }
  0x53   :  { %1008 = vmatpush1.bf16.msra.mxu0 %v2295_v5  ;;  %1094 = vmatpush1.bf16.msra.mxu1 %v2297_v7  ;;  %v102_v5 = vld [vmem:[#allocation2 + $0x198] sm:$0xff]  ;;  %v2219_v7 = vcombine.low %v93_v57, %v97_v60 }
  0x54   :  { %1020 = vmatprep.subr.bf16.mxu0 %v2304_v9  ;;  %1106 = vmatprep.subr.bf16.mxu1 %v2306_v10  ;;  %v2221_v9 = vcombine.low %v94_v61, %v98_v62  ;;  %v2228_v10 = vcombine.high %v101_v3, %v105_v4  ;;  %v2229_v17 = vcombine.low %v102_v5, %v106_v6  ;;  %v150_v57 = vld [vmem:[#allocation2 + $0x318] sm:$0xff]  ;;  %v157_v62 = vld [vmem:[#allocation2 + $0x350] sm:$0xff] }
  0x56   :  { %1010 = vmatmul.mubr.bf16.vlgmr.msra.gmra.mrb[0].mxu0 %v2750_v8  ;;  %1096 = vmatmul.mubr.bf16.vlgmr.msra.gmra.mrb[0].mxu1 %v2750_v8 }
  0x57   :  { %1021 = vmatpush1.bf16.msra.mxu0 %v2303_v11  ;;  %1107 = vmatpush1.bf16.msra.mxu1 %v2305_v15  ;;  %v2230_v11 = vcombine.high %v102_v5, %v106_v6  ;;  %v114_v15 = vld [vmem:[#allocation2 + $0x1f8] sm:$0xff]  ;;  %v165_v6 = vld [vmem:[#allocation2 + $0x390] sm:$0xff] }
  0x58   :  { %2319 = vmatprep.subr.msk.bf16.mxu0 %vm952_vm0, %v2312_v16  ;;  %2321 = vmatprep.subr.msk.bf16.mxu1 %vm952_vm0, %v2314_v20  ;;  %v2227_v16 = vcombine.low %v101_v3, %v105_v4  ;;  %v2238_v19 = vcombine.high %v110_v14, %v114_v15  ;;  %v117_v20 = vld [vmem:[#allocation2 + $0x210] sm:$0xff]  ;;  %v2237_v26 = vcombine.low %v110_v14, %v114_v15 }
  0x59   :  { %1052 = vmatprep.mubr.bf16.mxu0 %v2675_v24  ;;  %1138 = vmatprep.mubr.bf16.mxu1 %v2675_v24  ;;  %v173_v15 = vld [vmem:[#allocation2 + $0x3d0] sm:$0xff] }
  0x5b   :  { %1023 = vmatpush1.bf16.msra.mxu0 %v954_v21  ;;  %1109 = vmatpush1.bf16.msra.mxu1 %v960_v22  ;;  %v121_v21 = vld [vmem:[#allocation2 + $0x230] sm:$0xff]  ;;  %v118_v22 = vld [vmem:[#allocation2 + $0x218] sm:$0xff] }
  0x5c   :  { %1149 = vmatprep.subr.bf16.mxu0 %v2180_v23  ;;  %1235 = vmatprep.subr.bf16.mxu1 %v2182_v25  ;;  %v122_v23 = vld [vmem:[#allocation2 + $0x238] sm:$0xff]  ;;  %v2235_v25 = vcombine.low %v109_v12, %v113_v13  ;;  %v2244_v27 = vcombine.high %v117_v20, %v121_v21 }
  0x5d   :  { %v2246_v29 = vcombine.high %v118_v22, %v122_v23 }
  0x62   :  { %2320 = vmatmul.mubr.msk.bf16.vlgmr.msra.gmra.mrb[0].mxu0 %vm948_vm1, %v2763_v28  ;;  %2322 = vmatmul.mubr.msk.bf16.vlgmr.msra.gmra.mrb[0].mxu1 %vm948_vm1, %v2763_v28 }
  0x63   :  { %1150 = vmatpush1.bf16.msra.mxu0 %v2179_v31  ;;  %1236 = vmatpush1.bf16.msra.mxu1 %v2181_v34  ;;  %v129_v31 = vld [vmem:[#allocation2 + $0x270] sm:$0xff]  ;;  %v2243_v34 = vcombine.low %v117_v20, %v121_v21 }
  0x64   :  { %1151 = vmatprep.subr.bf16.mxu0 %v2188_v35  ;;  %1237 = vmatprep.subr.bf16.mxu1 %v2190_v38  ;;  %v2245_v35 = vcombine.low %v118_v22, %v122_v23  ;;  %v2252_v36 = vcombine.high %v125_v30, %v129_v31  ;;  %v133_v38 = vld [vmem:[#allocation2 + $0x290] sm:$0xff] }
  0x65   :  { %1181 = vmatprep.mubr.bf16.mxu0 %v2743_v56  ;;  %1267 = vmatprep.mubr.bf16.mxu1 %v2743_v56  ;;  %v2214_v56 = vcombine.high %v86_v52, %v90_v53  ;;  %v2270_v53 = vcombine.high %v142_v48, %v146_v49  ;;  %v181_v23 = vld [vmem:[#allocation2 + $0x410] sm:$0xff] }
  0x67   :  { %1152 = vmatpush1.bf16.msra.mxu0 %v2187_v39  ;;  %1238 = vmatpush1.bf16.msra.mxu1 %v2189_v42  ;;  %v137_v39 = vld [vmem:[#allocation2 + $0x2b0] sm:$0xff]  ;;  %v2251_v42 = vcombine.low %v125_v30, %v129_v31 }
  0x68   :  { %1153 = vmatprep.subr.bf16.mxu0 %v2196_v43  ;;  %1239 = vmatprep.subr.bf16.mxu1 %v2198_v46  ;;  %v2253_v43 = vcombine.low %v126_v32, %v130_v33  ;;  %v2260_v44 = vcombine.high %v133_v38, %v137_v39  ;;  %v141_v46 = vld [vmem:[#allocation2 + $0x2d0] sm:$0xff] }
  0x69   :  { %v189_v33 = vld [vmem:[#allocation2 + $0x450] sm:$0xff] }
  0x6b   :  { %1154 = vmatpush1.bf16.msra.mxu0 %v2195_v47  ;;  %1240 = vmatpush1.bf16.msra.mxu1 %v2197_v50  ;;  %v145_v47 = vld [vmem:[#allocation2 + $0x2f0] sm:$0xff]  ;;  %v2259_v50 = vcombine.low %v133_v38, %v137_v39  ;;  %v2315_v38 = vcombine.low %v189_v33, %v189_v33 }
  0x6c   :  { %1155 = vmatprep.subr.bf16.mxu0 %v2204_v51  ;;  %1241 = vmatprep.subr.bf16.mxu1 %v2206_v54  ;;  %v2261_v51 = vcombine.low %v134_v40, %v138_v41  ;;  %v2268_v52 = vcombine.high %v141_v46, %v145_v47  ;;  %v149_v54 = vld [vmem:[#allocation2 + $0x310] sm:$0xff] }
  0x6d   :  { %v966_v41 = vsel %vm952_vm0, %v2315_v38, 0 }
  0x6f   :  { %1156 = vmatpush1.bf16.msra.mxu0 %v2203_v55  ;;  %1242 = vmatpush1.bf16.msra.mxu1 %v2205_v58  ;;  %v153_v55 = vld [vmem:[#allocation2 + $0x330] sm:$0xff]  ;;  %v154_v58 = vld [vmem:[#allocation2 + $0x338] sm:$0xff] }
  0x70   :  { %1157 = vmatprep.subr.bf16.mxu0 %v2212_v59  ;;  %1243 = vmatprep.subr.bf16.mxu1 %v2214_v56  ;;  %v2267_v59 = vcombine.low %v141_v46, %v145_v47  ;;  %v2269_v56 = vcombine.low %v142_v48, %v146_v49  ;;  %v2276_v60 = vcombine.high %v149_v54, %v153_v55  ;;  %v2582_v46 = vld [vmem:[%s3078_s3 + $0x8] ss:$12 sps:$4 sm:$0xff]   ;;  %v2560_v47 = vld [vmem:[%s3078_s3 + $0x30] ss:$12 sps:$4 sm:$0xff]   ;;  %v2586_v48 = vld [vmem:[%s3078_s3 + $0xe0] ss:$12 sps:$4 sm:$0xff]  }
  0x71   :  { %v2278_v61 = vcombine.high %v150_v57, %v154_v58  ;;  %v2277_v3 = vcombine.low %v150_v57, %v154_v58  ;;  %v2565_v49 = vld [vmem:[%s3078_s3 + $0x4c] ss:$12 sps:$4 sm:$0xff]   ;;  %v2571_v58 = vld [vmem:[%s3078_s3 + $0x7c] ss:$12 sps:$4 sm:$0xff]  }
  0x72   :  { %v2566_v57 = vld [vmem:[%s3078_s3 + $0x60] ss:$12 sps:$4 sm:$0xff]  }
  0x73   :  { %1158 = vmatpush1.bf16.msra.mxu0 %v2211_v63  ;;  %1244 = vmatpush1.bf16.msra.mxu1 %v2213_v0  ;;  %v161_v63 = vld [vmem:[#allocation2 + $0x370] sm:$0xff]  ;;  %v158_v0 = vld [vmem:[#allocation2 + $0x358] sm:$0xff] }
  0x74   :  { %1159 = vmatprep.subr.bf16.mxu0 %v2220_v1  ;;  %1245 = vmatprep.subr.bf16.mxu1 %v2222_v2  ;;  %v162_v1 = vld [vmem:[#allocation2 + $0x378] sm:$0xff]  ;;  %v2275_v2 = vcombine.low %v149_v54, %v153_v55  ;;  %v2284_v4 = vcombine.high %v157_v62, %v161_v63 }
  0x75   :  { %v2286_v5 = vcombine.high %v158_v0, %v162_v1  ;;  %v2285_v12 = vcombine.low %v158_v0, %v162_v1  ;;  %v2592_v54 = vld [vmem:[%s3078_s3 + $0x38] ss:$12 sps:$4 sm:$0xff]   ;;  %v2596_v55 = vld [vmem:[%s3078_s3 + $0x110] ss:$12 sps:$4 sm:$0xff]   ;;  %v2575_v0 = vld [vmem:[%s3078_s3 + $0xa8] ss:$12 sps:$4 sm:$0xff]  }
  0x76   :  { %v2580_v1 = vld [vmem:[%s3078_s3 + $0xc4] ss:$12 sps:$4 sm:$0xff]  }
  0x77   :  { %1160 = vmatpush1.bf16.msra.mxu0 %v2219_v7  ;;  %1246 = vmatpush1.bf16.msra.mxu1 %v2221_v9  ;;  %v169_v7 = vld [vmem:[#allocation2 + $0x3b0] sm:$0xff]  ;;  %v166_v9 = vld [vmem:[#allocation2 + $0x398] sm:$0xff] }
  0x78   :  { %1161 = vmatprep.subr.bf16.mxu0 %v2228_v10  ;;  %1247 = vmatprep.subr.bf16.mxu1 %v2230_v11  ;;  %v170_v10 = vld [vmem:[#allocation2 + $0x3b8] sm:$0xff]  ;;  %v2283_v11 = vcombine.low %v157_v62, %v161_v63  ;;  %v2292_v13 = vcombine.high %v165_v6, %v169_v7 }
  0x79   :  { %v2294_v14 = vcombine.high %v166_v9, %v170_v10  ;;  %v2293_v20 = vcombine.low %v166_v9, %v170_v10  ;;  %v2572_v62 = vld [vmem:[%s3078_s3 + $0x90] ss:$12 sps:$4 sm:$0xff]   ;;  %v2577_v63 = vld [vmem:[%s3078_s3 + $0xac] ss:$12 sps:$4 sm:$0xff]   ;;  %v2593_v9 = vld [vmem:[%s3078_s3 + $0x108] ss:$12 sps:$4 sm:$0xff]  }
  0x7a   :  { %v2600_v10 = vld [vmem:[%s3078_s3 + $0x124] ss:$12 sps:$4 sm:$0xff]  }
  0x7b   :  { %1162 = vmatpush1.bf16.msra.mxu0 %v2227_v16  ;;  %1248 = vmatpush1.bf16.msra.mxu1 %v2229_v17  ;;  %v177_v16 = vld [vmem:[#allocation2 + $0x3f0] sm:$0xff]  ;;  %v174_v17 = vld [vmem:[#allocation2 + $0x3d8] sm:$0xff] }
  0x7c   :  { %1163 = vmatprep.subr.bf16.mxu0 %v2236_v18  ;;  %1249 = vmatprep.subr.bf16.mxu1 %v2238_v19  ;;  %v178_v18 = vld [vmem:[#allocation2 + $0x3f8] sm:$0xff]  ;;  %v2291_v19 = vcombine.low %v165_v6, %v169_v7  ;;  %v2300_v21 = vcombine.high %v173_v15, %v177_v16 }
  0x7d   :  { %v2302_v22 = vcombine.high %v174_v17, %v178_v18  ;;  %v2301_v30 = vcombine.low %v174_v17, %v178_v18  ;;  %v2588_v6 = vld [vmem:[%s3078_s3 + $0xf0] ss:$12 sps:$4 sm:$0xff]   ;;  %v2595_v7 = vld [vmem:[%s3078_s3 + $0x10c] ss:$12 sps:$4 sm:$0xff]   ;;  %v2610_v17 = vld [vmem:[%s3078_s3 + $0x154] ss:$12 sps:$4 sm:$0xff]  }
  0x7e   :  { %v2611_v18 = vld [vmem:[%s3078_s3 + $0x158] ss:$12 sps:$4 sm:$0xff]  }
  0x7f   :  { %1164 = vmatpush1.bf16.msra.mxu0 %v2235_v25  ;;  %1250 = vmatpush1.bf16.msra.mxu1 %v2237_v26  ;;  %v185_v25 = vld [vmem:[#allocation2 + $0x430] sm:$0xff]  ;;  %v182_v26 = vld [vmem:[#allocation2 + $0x418] sm:$0xff] }
  0x80   :  { %1165 = vmatprep.subr.bf16.mxu0 %v2244_v27  ;;  %1251 = vmatprep.subr.bf16.mxu1 %v2246_v29  ;;  %v186_v27 = vld [vmem:[#allocation2 + $0x438] sm:$0xff]  ;;  %v2299_v29 = vcombine.low %v173_v15, %v177_v16  ;;  %v2308_v31 = vcombine.high %v181_v23, %v185_v25  ;;  %v2607_v16 = vld [vmem:[%s3078_s3 + $0x80] ss:$12 sps:$4 sm:$0xff]  }
  0x81   :  { %v2310_v32 = vcombine.high %v182_v26, %v186_v27  ;;  %v2603_v15 = vld [vmem:[%s3078_s3 + $0x138] ss:$12 sps:$4 sm:$0xff]  }
  0x83   :  { %1166 = vmatpush1.bf16.msra.mxu0 %v2243_v34  ;;  %1252 = vmatpush1.bf16.msra.mxu1 %v2245_v35  ;;  %v190_v34 = vld [vmem:[#allocation2 + $0x458] sm:$0xff]  ;;  %v2307_v35 = vcombine.low %v181_v23, %v185_v25  ;;  %v2613_v23 = vld [vmem:[%s3078_s3 + $0x168] ss:$12 sps:$4 sm:$0xff]  }
  0x84   :  { %1167 = vmatprep.subr.bf16.mxu0 %v2252_v36  ;;  %1253 = vmatprep.subr.bf16.mxu1 %v2254_v37  ;;  %v2309_v36 = vcombine.low %v182_v26, %v186_v27  ;;  %v2316_v37 = vcombine.high %v189_v33, %v189_v33  ;;  %v2318_v39 = vcombine.high %v190_v34, %v190_v34  ;;  %v2617_v25 = vld [vmem:[%s3078_s3 + $0xb0] ss:$12 sps:$4 sm:$0xff]   ;;  %v2618_v26 = vld [vmem:[%s3080_s5 + $0x40] sm:$0xff]   ;;  %v2676_v27 = vmov 0.0  }
  0x85   :  { %v2317_v40 = vcombine.low %v190_v34, %v190_v34 }
  0x87   :  { %1168 = vmatpush1.bf16.msra.mxu0 %v2251_v42  ;;  %1254 = vmatpush1.bf16.msra.mxu1 %v2253_v43  ;;  %v972_v42 = vsel %vm952_vm0, %v2317_v40, 0  ;;  %v2556_v43 = vld [vmem:[%s3078_s3 + $0x4] ss:$12 sps:$4 sm:$0xff]  }
  0x88   :  { %1169 = vmatprep.subr.bf16.mxu0 %v2260_v44  ;;  %1255 = vmatprep.subr.bf16.mxu1 %v2262_v45  ;;  %v2557_v44 = vld [vmem:[%s3078_s3 + $0x18] ss:$12 sps:$4 sm:$0xff]   ;;  %v2581_v45 = vld [vmem:[%s3078_s3 + $0xc8] ss:$12 sps:$4 sm:$0xff]  }
  0x8b   :  { %1170 = vmatpush1.bf16.msra.mxu0 %v2259_v50  ;;  %1256 = vmatpush1.bf16.msra.mxu1 %v2261_v51  ;;  %v2587_v50 = vld [vmem:[%s3078_s3 + $0x20] ss:$12 sps:$4 sm:$0xff]   ;;  %v2591_v51 = vld [vmem:[%s3078_s3 + $0xf8] ss:$12 sps:$4 sm:$0xff]  }
  0x8c   :  { %1171 = vmatprep.subr.bf16.mxu0 %v2268_v52  ;;  %1257 = vmatprep.subr.bf16.mxu1 %v2270_v53  ;;  %v2563_v52 = vld [vmem:[%s3078_s3 + $0x48] ss:$12 sps:$4 sm:$0xff]   ;;  %v2568_v53 = vld [vmem:[%s3078_s3 + $0x64] ss:$12 sps:$4 sm:$0xff]  }
  0x8f   :  { %1172 = vmatpush1.bf16.msra.mxu0 %v2267_v59  ;;  %1258 = vmatpush1.bf16.msra.mxu1 %v2269_v56  ;;  %v2597_v59 = vld [vmem:[%s3078_s3 + $0x50] ss:$12 sps:$4 sm:$0xff]   ;;  %v2601_v56 = vld [vmem:[%s3078_s3 + $0x128] ss:$12 sps:$4 sm:$0xff]  }
  0x90   :  { %1173 = vmatprep.subr.bf16.mxu0 %v2276_v60  ;;  %1259 = vmatprep.subr.bf16.mxu1 %v2278_v61  ;;  %v2569_v60 = vld [vmem:[%s3078_s3 + $0x78] ss:$12 sps:$4 sm:$0xff]   ;;  %v2574_v61 = vld [vmem:[%s3078_s3 + $0x94] ss:$12 sps:$4 sm:$0xff]  }
  0x93   :  { %1174 = vmatpush1.bf16.msra.mxu0 %v2275_v2  ;;  %1260 = vmatpush1.bf16.msra.mxu1 %v2277_v3  ;;  %v2578_v2 = vld [vmem:[%s3078_s3 + $0xc0] ss:$12 sps:$4 sm:$0xff]   ;;  %v2585_v3 = vld [vmem:[%s3078_s3 + $0xdc] ss:$12 sps:$4 sm:$0xff]  }
  0x94   :  { %1175 = vmatprep.subr.bf16.mxu0 %v2284_v4  ;;  %1261 = vmatprep.subr.bf16.mxu1 %v2286_v5  ;;  %v2583_v4 = vld [vmem:[%s3078_s3 + $0xd8] ss:$12 sps:$4 sm:$0xff]   ;;  %v2590_v5 = vld [vmem:[%s3078_s3 + $0xf4] ss:$12 sps:$4 sm:$0xff]  }
  0x97   :  { %1176 = vmatpush1.bf16.msra.mxu0 %v2283_v11  ;;  %1262 = vmatpush1.bf16.msra.mxu1 %v2285_v12  ;;  %v2598_v11 = vld [vmem:[%s3078_s3 + $0x120] ss:$12 sps:$4 sm:$0xff]   ;;  %v2602_v12 = vld [vmem:[%s3078_s3 + $0x68] ss:$12 sps:$4 sm:$0xff]  }
  0x98   :  { %1177 = vmatprep.subr.bf16.mxu0 %v2292_v13  ;;  %1263 = vmatprep.subr.bf16.mxu1 %v2294_v14  ;;  %v2605_v13 = vld [vmem:[%s3078_s3 + $0x13c] ss:$12 sps:$4 sm:$0xff]   ;;  %v2606_v14 = vld [vmem:[%s3078_s3 + $0x140] ss:$12 sps:$4 sm:$0xff]  }
  0x9b   :  { %1178 = vmatpush1.bf16.msra.mxu0 %v2291_v19  ;;  %1264 = vmatpush1.bf16.msra.mxu1 %v2293_v20  ;;  %v2608_v19 = vld [vmem:[%s3078_s3 + $0x150] ss:$12 sps:$4 sm:$0xff]   ;;  %v2612_v20 = vld [vmem:[%s3078_s3 + $0x98] ss:$12 sps:$4 sm:$0xff]  }
  0x9c   :  { %1179 = vmatprep.subr.bf16.mxu0 %v2300_v21  ;;  %1265 = vmatprep.subr.bf16.mxu1 %v2302_v22  ;;  %v2615_v21 = vld [vmem:[%s3078_s3 + $0x16c] ss:$12 sps:$4 sm:$0xff]   ;;  %v2616_v22 = vld [vmem:[%s3078_s3 + $0x170] ss:$12 sps:$4 sm:$0xff]  }
  0x9f   :  { %1180 = vmatpush1.bf16.msra.mxu0 %v2299_v29  ;;  %1266 = vmatpush1.bf16.msra.mxu1 %v2301_v30  ;;  %v193_v29 = vlaneseq }
  0xa0   :  { %1192 = vmatprep.subr.bf16.mxu0 %v2308_v31  ;;  %1278 = vmatprep.subr.bf16.mxu1 %v2310_v32  ;;  %v191_v32 = vld [vmem:[%s3077_s2] sm:$0xff] }
  0xa1   :  { %v2931_v30 = vshrl.u32 %v193_v29, 7 }
  0xa2   :  { %1182 = vmatmul.mubr.bf16.vlgmr.msra.gmra.mrb[4].mxu0 %v2750_v8  ;;  %1268 = vmatmul.mubr.bf16.vlgmr.msra.gmra.mrb[4].mxu1 %v2750_v8  ;;  %v2554_v8 = vld [vmem:[%s3078_s3] ss:$12 sps:$4 sm:$0xff]  }
  0xa3   :  { %1193 = vmatpush1.bf16.msra.mxu0 %v2307_v35  ;;  %1279 = vmatpush1.bf16.msra.mxu1 %v2309_v36  ;;  %v195_v31 = vsub.s32 0, %v2931_v30  ;;  %v203_v33 = vsub.s32 2, %v2931_v30  ;;  %v199_v34 = vsub.s32 1, %v2931_v30  ;;  %v207_v35 = vsub.s32 3, %v2931_v30 }
  0xa4   :  { %2323 = vmatprep.subr.msk.bf16.mxu0 %vm952_vm0, %v2316_v37  ;;  %2325 = vmatprep.subr.msk.bf16.mxu1 %vm952_vm0, %v2318_v39 }
  0xa5   :  { %1224 = vmatprep.mubr.bf16.mxu0 %v2675_v24  ;;  %1310 = vmatprep.mubr.bf16.mxu1 %v2675_v24  ;;  %v2559_v24 = vld [vmem:[%s3078_s3 + $0x1c] ss:$12 sps:$4 sm:$0xff]   ;;  %v196_v36 = vrot.slane %v191_v32, %v195_v31  ;;  %v204_v37 = vrot.slane %v191_v32, %v203_v33  ;;  %v200_v38 = vrot.slane %v191_v32, %v199_v34 }
  0xa6   :  { %v208_v39 = vrot.slane %v191_v32, %v207_v35 }
  0xa7   :  { %1195 = vmatpush1.bf16.msra.mxu0 %v966_v41  ;;  %1281 = vmatpush1.bf16.msra.mxu1 %v972_v42 }
  0xa8   :  { %1688 = vmatprep.subr.bf16.mxu0 %v2556_v43  ;;  %2408 = vmatprep.subr.bf16.mxu1 %v2581_v45 }
  0xae   :  { %2324 = vmatmul.mubr.msk.bf16.vlgmr.msra.gmra.mrb[4].mxu0 %vm948_vm1, %v2763_v28  ;;  %2326 = vmatmul.mubr.msk.bf16.vlgmr.msra.gmra.mrb[4].mxu1 %vm948_vm1, %v2763_v28  ;;  %v2562_v28 = vld [vmem:[%s3078_s3 + $0x34] ss:$12 sps:$4 sm:$0xff]  }
  0xaf   :  { %1689 = vmatpush1.bf16.msra.mxu0 %v2554_v8  ;;  %2409 = vmatpush3.bf16.msra.mxu1 %v2582_v46 }
  0xb0   :  { %1690 = vmatprep.subr.bf16.mxu0 %v2559_v24  ;;  %2410 = vmatprep.subr.bf16.mxu1 %v2586_v48 }
  0xb3   :  { %1691 = vmatpush1.bf16.msra.mxu0 %v2557_v44  ;;  %2411 = vmatpush3.bf16.msra.mxu1 %v2587_v50 }
  0xb4   :  { %1692 = vmatprep.subr.bf16.mxu0 %v2562_v28  ;;  %2412 = vmatprep.subr.bf16.mxu1 %v2591_v51 }
  0xb7   :  { %1693 = vmatpush1.bf16.msra.mxu0 %v2560_v47  ;;  %2413 = vmatpush3.bf16.msra.mxu1 %v2592_v54 }
  0xb8   :  { %1694 = vmatprep.subr.bf16.mxu0 %v2565_v49  ;;  %2414 = vmatprep.subr.bf16.mxu1 %v2596_v55 }
  0xbb   :  { %1695 = vmatpush1.bf16.msra.mxu0 %v2563_v52  ;;  %2415 = vmatpush3.bf16.msra.mxu1 %v2597_v59 }
  0xbc   :  { %1696 = vmatprep.subr.bf16.mxu0 %v2568_v53  ;;  %2416 = vmatprep.subr.bf16.mxu1 %v2601_v56 }
  0xbf   :  { %1697 = vmatpush1.bf16.msra.mxu0 %v2566_v57  ;;  %2417 = vmatpush3.bf16.msra.mxu1 %v2602_v12 }
  0xc0   :  { %1698 = vmatprep.subr.bf16.mxu0 %v2571_v58  ;;  %2418 = vmatprep.subr.bf16.mxu1 %v2606_v14 }
  0xc3   :  { %1699 = vmatpush1.bf16.msra.mxu0 %v2569_v60  ;;  %2419 = vmatpush3.bf16.msra.mxu1 %v2607_v16 }
  0xc4   :  { %1700 = vmatprep.subr.bf16.mxu0 %v2574_v61  ;;  %2420 = vmatprep.subr.bf16.mxu1 %v2611_v18 }
  0xc7   :  { %1701 = vmatpush1.bf16.msra.mxu0 %v2572_v62  ;;  %2421 = vmatpush3.bf16.msra.mxu1 %v2612_v20 }
  0xc8   :  { %1702 = vmatprep.subr.bf16.mxu0 %v2577_v63  ;;  %2422 = vmatprep.subr.bf16.mxu1 %v2616_v22 }
  0xcb   :  { %1703 = vmatpush1.bf16.msra.mxu0 %v2575_v0  ;;  %2423 = vmatpush3.bf16.msra.mxu1 %v2617_v25 }
  0xcc   :  { %1704 = vmatprep.subr.bf16.mxu0 %v2580_v1  ;;  %2430 = vmatprep.subr.bf16.mxu1 %v2618_v26  ;;  %v211_v1 = vsub.s32 4, %v2931_v30 }
  0xcf   :  { %1705 = vmatpush1.bf16.msra.mxu0 %v2578_v2  ;;  %v219_v2 = vsub.s32 6, %v2931_v30 }
  0xd0   :  { %1706 = vmatprep.subr.bf16.mxu0 %v2585_v3  ;;  %v215_v3 = vsub.s32 5, %v2931_v30 }
  0xd3   :  { %1707 = vmatpush1.bf16.msra.mxu0 %v2583_v4  ;;  %v223_v4 = vsub.s32 7, %v2931_v30 }
  0xd4   :  { %1708 = vmatprep.subr.bf16.mxu0 %v2590_v5  ;;  %v212_v5 = vrot.slane %v191_v32, %v211_v1  ;;  %v2636_v1 = vld [vmem:[%s3080_s5 + $0xa0] sm:$0xff]  }
  0xd7   :  { %1709 = vmatpush1.bf16.msra.mxu0 %v2588_v6  ;;  %v220_v6 = vrot.slane %v191_v32, %v219_v2  ;;  %v2637_v2 = vld [vmem:[%s3080_s5 + $0x78] sm:$0xff]  }
  0xd8   :  { %1710 = vmatprep.subr.bf16.mxu0 %v2595_v7  ;;  %v216_v7 = vrot.slane %v191_v32, %v215_v3  ;;  %v2638_v3 = vld [vmem:[%s3080_s5 + $0x38] sm:$0xff]  }
  0xdb   :  { %1711 = vmatpush1.bf16.msra.mxu0 %v2593_v9  ;;  %v224_v9 = vrot.slane %v191_v32, %v223_v4  ;;  %v2639_v4 = vld [vmem:[%s3080_s5 + $0xa8] sm:$0xff]  }
  0xdc   :  { %1712 = vmatprep.subr.bf16.mxu0 %v2600_v10 }
  0xdf   :  { %1713 = vmatpush1.bf16.msra.mxu0 %v2598_v11 }
  0xe0   :  { %1714 = vmatprep.subr.bf16.mxu0 %v2605_v13 }
  0xe3   :  { %1715 = vmatpush1.bf16.msra.mxu0 %v2603_v15 }
  0xe4   :  { %1716 = vmatprep.subr.bf16.mxu0 %v2610_v17 }
  0xe7   :  { %1717 = vmatpush1.bf16.msra.mxu0 %v2608_v19 }
  0xe8   :  { %1718 = vmatprep.subr.bf16.mxu0 %v2615_v21 }
  0xeb   :  { %1719 = vmatpush1.bf16.msra.mxu0 %v2613_v23 }
  0xec   :  { %2468 = vmatprep.subr.bf16.mxu0 %v2676_v27 }
 0x135   :  { %v1054_v40 = vpop.f32.mrb[0].mxu0  ;;  %v1140_v42 = vpop.f32.mrb[0].mxu1 }
 0x136   :  { %v2504_v41 = vadd.f32 %v1054_v40, %v196_v36  ;;  %v1056_v8 = vpop.f32.mrb[1].mxu0  ;;  %v2508_v43 = vadd.f32 %v1140_v42, %v204_v37  ;;  %v1142_v44 = vpop.f32.mrb[1].mxu1 }
 0x137   :  { %v2505_v24 = vadd.f32 %v1056_v8, %v200_v38  ;;  %v1058_v28 = vpop.f32.mrb[2].mxu0  ;;  %v2509_v46 = vadd.f32 %v1142_v44, %v208_v39  ;;  %v1144_v48 = vpop.f32.mrb[2].mxu1 }
 0x138   :  { %v1321_v45 = vmax.f32 %v2504_v41, 0.0  ;;  %v2506_v47 = vadd.f32 %v1058_v28, %v196_v36  ;;  %v1060_v49 = vpop.f32.mrb[3].mxu0  ;;  %v1323_v50 = vmax.f32 %v2508_v43, 0.0  ;;  %v2510_v52 = vadd.f32 %v1144_v48, %v204_v37  ;;  %v1146_v54 = vpop.f32.mrb[3].mxu1  ;;  %v2619_v48 = vld [vmem:[%s3080_s5] sm:$0xff]  }
 0x139   :  { %v1322_v51 = vmax.f32 %v2505_v24, 0.0  ;;  %v2507_v53 = vadd.f32 %v1060_v49, %v200_v38  ;;  %v1324_v55 = vmax.f32 %v2509_v46, 0.0  ;;  %v2511_v58 = vadd.f32 %v1146_v54, %v208_v39  ;;  %v2624_v49 = vld [vmem:[%s3080_s5 + $0x80] sm:$0xff]   ;;  %v2623_v54 = vld [vmem:[%s3080_s5 + $0x10] sm:$0xff]  }
 0x13a   :  { %v1329_v57 = vmax.f32 %v2506_v47, 0.0  ;;  %v1337_v59 = vmax.f32 %v1321_v45, %v1323_v50  ;;  %v1331_v56 = vmax.f32 %v2510_v52, 0.0  ;;  %v2620_v50 = vld [vmem:[%s3080_s5 + $0x48] sm:$0xff]  }
 0x13b   :  { %v1330_v60 = vmax.f32 %v2507_v53, 0.0  ;;  %v1338_v61 = vmax.f32 %v1322_v51, %v1324_v55  ;;  %v1332_v62 = vmax.f32 %v2511_v58, 0.0  ;;  %v2621_v51 = vld [vmem:[%s3080_s5 + $0x8] sm:$0xff]   ;;  %v2622_v53 = vld [vmem:[%s3080_s5 + $0x50] sm:$0xff]   ;;  %v2626_v58 = vld [vmem:[%s3080_s5 + $0x18] sm:$0xff]  }
 0x13c   :  { %v1339_v63 = vmax.f32 %v1329_v57, %v1331_v56  ;;  %v2627_v52 = vld [vmem:[%s3080_s5 + $0x88] sm:$0xff]   ;;  %v2630_v55 = vld [vmem:[%s3080_s5 + $0x90] sm:$0xff]   ;;  %v2625_v57 = vld [vmem:[%s3080_s5 + $0x58] sm:$0xff]  }
 0x13d   :  { %v1340_v0 = vmax.f32 %v1330_v60, %v1332_v62  ;;  %v2629_v56 = vld [vmem:[%s3080_s5 + $0x20] sm:$0xff]   ;;  %v2631_v60 = vld [vmem:[%s3080_s5 + $0x68] sm:$0xff]   ;;  %v2633_v62 = vld [vmem:[%s3080_s5 + $0x98] sm:$0xff]  }
 0x181   :  { %v1226_v10 = vpop.f32.mrb[4].mxu0  ;;  %v1312_v12 = vpop.f32.mrb[4].mxu1 }
 0x182   :  { %v2512_v11 = vadd.f32 %v1226_v10, %v212_v5  ;;  %v1228_v13 = vpop.f32.mrb[5].mxu0  ;;  %v2516_v14 = vadd.f32 %v1312_v12, %v220_v6  ;;  %v1314_v16 = vpop.f32.mrb[5].mxu1 }
 0x183   :  { %v2513_v15 = vadd.f32 %v1228_v13, %v216_v7  ;;  %v1230_v17 = vpop.f32.mrb[6].mxu0  ;;  %v2517_v19 = vadd.f32 %v1314_v16, %v224_v9  ;;  %v1316_v21 = vpop.f32.mrb[6].mxu1 }
 0x184   :  { %v1325_v18 = vmax.f32 %v2512_v11, 0.0  ;;  %v2514_v20 = vadd.f32 %v1230_v17, %v212_v5  ;;  %v1232_v22 = vpop.f32.mrb[7].mxu0  ;;  %v1327_v23 = vmax.f32 %v2516_v14, 0.0  ;;  %v2518_v26 = vadd.f32 %v1316_v21, %v220_v6  ;;  %v1318_v35 = vpop.f32.mrb[7].mxu1  ;;  %v1415_v5 = vld [vmem:[%s3079_s4] sm:$0x7] }
 0x185   :  { %v1326_v25 = vmax.f32 %v2513_v15, 0.0  ;;  %v2515_v29 = vadd.f32 %v1232_v22, %v216_v7  ;;  %v1328_v36 = vmax.f32 %v2517_v19, 0.0  ;;  %v2519_v37 = vadd.f32 %v1318_v35, %v224_v9 }
 0x186   :  { %v1333_v32 = vmax.f32 %v2514_v20, 0.0  ;;  %v1341_v38 = vmax.f32 %v1325_v18, %v1327_v23  ;;  %v1335_v39 = vmax.f32 %v2518_v26, 0.0  ;;  %v1420_v6 = vrot.slane %v1415_v5, %v195_v31 }
 0x187   :  { %v1334_v40 = vmax.f32 %v2515_v29, 0.0  ;;  %v1342_v41 = vmax.f32 %v1326_v25, %v1328_v36  ;;  %v1336_v42 = vmax.f32 %v2519_v37, 0.0  ;;  %v1424_v7 = vrot.slane %v1415_v5, %v199_v34  ;;  %v2640_v37 = vld [vmem:[%s3082_s7] sm:$0xff]  }
 0x188   :  { %v1345_v8 = vmax.f32 %v1337_v59, %v1341_v38  ;;  %v1343_v43 = vmax.f32 %v1333_v32, %v1335_v39  ;;  %v2628_v59 = vld [vmem:[%s3080_s5 + $0x60] sm:$0xff]   ;;  %v1428_v11 = vrot.slane %v1415_v5, %v203_v33  ;;  %v2641_v39 = vld [vmem:[%s3082_s7 + $0x8] sm:$0xff]  }
 0x189   :  { %v1346_v24 = vmax.f32 %v1338_v61, %v1342_v41  ;;  %v1344_v44 = vmax.f32 %v1334_v40, %v1336_v42  ;;  %v2632_v61 = vld [vmem:[%s3080_s5 + $0x28] sm:$0xff]   ;;  %v2642_v40 = vld [vmem:[%s3082_s7 + $0x10] sm:$0xff]   ;;  %v2643_v41 = vld [vmem:[%s3082_s7 + $0x18] sm:$0xff]  }
 0x18a   :  { %v1347_v28 = vmax.f32 %v1339_v63, %v1343_v43  ;;  %v2634_v63 = vld [vmem:[%s3080_s5 + $0x70] sm:$0xff]   ;;  %v2644_v42 = vld [vmem:[%s3082_s7 + $0x20] sm:$0xff]  }
 0x18b   :  { %v1348_v45 = vmax.f32 %v1340_v0, %v1344_v44  ;;  %v2635_v0 = vld [vmem:[%s3080_s5 + $0x30] sm:$0xff]  }
 0x18c   :  { %v1349_v46 = vpack.c.bf16 %v1347_v28, %v1345_v8  ;;  %v2645_v8 = vld [vmem:[%s3082_s7 + $0x28] sm:$0xff]   ;;  %v2646_v43 = vld [vmem:[%s3082_s7 + $0x30] sm:$0xff]  }
 0x18d   :  { %v1350_v47 = vpack.c.bf16 %v1348_v45, %v1346_v24  ;;  %v2647_v24 = vld [vmem:[%s3082_s7 + $0x38] sm:$0xff]   ;;  %v2375_v45 = vld [vmem:[%s3081_s6] ss:$0 sm:$0xff] }
 0x18f   :  { %1720 = vmatprep.mubr.bf16.mxu0 %v1350_v47  ;;  %1763 = vmatprep.mubr.bf16.mxu1 %v1350_v47 }
 0x190   :  { %1721 = vmatmul.mubr.bf16.vlgmr.msra.gmra.mrb[8].mxu0 %v1349_v46  ;;  %1764 = vmatmul.mubr.bf16.vlgmr.msra.gmra.mrb[8].mxu1 %v1349_v46 }
 0x191   :  { %2431 = vmatpush3.bf16.msra.mxu1 %v2619_v48  ;;  %2469 = vmatpush3.bf16.msra.mxu0 %v2624_v49 }
 0x192   :  { %2432 = vmatprep.subr.bf16.mxu1 %v2620_v50  ;;  %2470 = vmatprep.subr.bf16.mxu0 %v2676_v27 }
 0x193   :  { %2480 = vmatprep.mubr.msk.bf16.mxu0 %vm2677_vm2, %v2676_v27 }
 0x195   :  { %2433 = vmatpush3.bf16.msra.mxu1 %v2621_v51  ;;  %2471 = vmatpush3.bf16.msra.mxu0 %v2627_v52 }
 0x196   :  { %2434 = vmatprep.subr.bf16.mxu1 %v2622_v53  ;;  %2472 = vmatprep.subr.bf16.mxu0 %v2676_v27 }
 0x199   :  { %2435 = vmatpush3.bf16.msra.mxu1 %v2623_v54  ;;  %2473 = vmatpush3.bf16.msra.mxu0 %v2630_v55 }
 0x19a   :  { %2436 = vmatprep.subr.bf16.mxu1 %v2625_v57  ;;  %2474 = vmatprep.subr.bf16.mxu0 %v2676_v27 }
 0x19d   :  { %2437 = vmatpush3.bf16.msra.mxu1 %v2626_v58  ;;  %2475 = vmatpush3.bf16.msra.mxu0 %v2633_v62 }
 0x19e   :  { %2438 = vmatprep.subr.bf16.mxu1 %v2628_v59  ;;  %2476 = vmatprep.subr.bf16.mxu0 %v2676_v27 }
 0x1a1   :  { %2439 = vmatpush3.bf16.msra.mxu1 %v2629_v56  ;;  %2477 = vmatpush3.bf16.msra.mxu0 %v2636_v1 }
 0x1a2   :  { %2440 = vmatprep.subr.bf16.mxu1 %v2631_v60  ;;  %2478 = vmatprep.subr.bf16.mxu0 %v2676_v27  ;;  %v2399_v60 = vld [vmem:[%s3083_s8] ss:$0 sm:$0xff] }
 0x1a5   :  { %2441 = vmatpush3.bf16.msra.mxu1 %v2632_v61  ;;  %2479 = vmatpush3.bf16.msra.mxu0 %v2639_v4 }
 0x1a6   :  { %2442 = vmatprep.subr.bf16.mxu1 %v2634_v63 }
 0x1a9   :  { %2443 = vmatpush3.bf16.msra.mxu1 %v2635_v0 }
 0x1aa   :  { %2444 = vmatprep.subr.bf16.mxu1 %v2637_v2 }
 0x1ad   :  { %2445 = vmatpush3.bf16.msra.mxu1 %v2638_v3 }
 0x1ae   :  { %2484 = vmatprep.subr.bf16.mxu1 %v2676_v27 }
 0x263   :  { %v1722_v9 = vpop.f32.mrb[8].mxu0  ;;  %v2424_v10 = vpop.f32.mrb[8].mxu1 }
 0x264   :  { %v1723_v12 = vadd.f32 %v1722_v9, %v1420_v6  ;;  %v1724_v13 = vpop.f32.mrb[9].mxu0  ;;  %v2425_v14 = vpop.f32.mrb[9].mxu1 }
 0x265   :  { %v1725_v15 = vadd.f32 %v1724_v13, %v1424_v7  ;;  %v2426_v16 = vadd.f32 %v2425_v14, %v2424_v10  ;;  %v1726_v17 = vpop.f32.mrb[10].mxu0  ;;  %v2427_v18 = vpop.f32.mrb[10].mxu1 }
 0x266   :  { %v1727_v19 = vadd.f32 %v1726_v17, %v1420_v6  ;;  %v1728_v20 = vpop.f32.mrb[11].mxu0  ;;  %v2428_v21 = vpop.f32.mrb[11].mxu1  ;;  %v1772_v25 = vmax.f32 %v1723_v12, 0.0 }
 0x267   :  { %v1766_v22 = vadd.f32 %v2426_v16, %v1428_v11  ;;  %v1729_v31 = vadd.f32 %v1728_v20, %v1424_v7  ;;  %v2429_v23 = vadd.f32 %v2428_v21, %v2427_v18  ;;  %v1773_v26 = vmax.f32 %v1725_v15, 0.0 }
 0x268   :  { %v1775_v34 = vmax.f32 %v1727_v19, 0.0 }
 0x269   :  { %v1776_v29 = vmax.f32 %v1729_v31, 0.0  ;;  %v1769_v35 = vadd.f32 %v2429_v23, %v1428_v11  ;;  %v1774_v33 = vmax.f32 %v1766_v22, 0.0 }
 0x26a   :  { %v1778_v30 = vpack.c.bf16 %v1775_v34, %v1772_v25 }
 0x26b   :  { %v1779_v36 = vpack.c.bf16 %v1776_v29, %v1773_v26  ;;  %v1777_v32 = vmax.f32 %v1769_v35, 0.0 }
 0x26d   :  { %v1780_v38 = vpack.c.bf16 %v1777_v32, %v1774_v33  ;;  %2000 = vmatprep.mubr.bf16.mxu1 %v1779_v36 }
 0x26e   :  { %2001 = vmatmul.mubr.bf16.vlgmr.msra.gmra.mrb[12].mxu1 %v1778_v30 }
 0x26f   :  { %2481 = vmatmul.mubr.msk.bf16.vlgmr.msra.gmra.mrb[12].mxu0 %vm1964_vm3, %v1780_v38  ;;  %2485 = vmatpush3.bf16.msra.mxu1 %v2640_v37 }
 0x270   :  { %2486 = vmatprep.subr.bf16.mxu1 %v2676_v27  ;;  %2500 = vmatprep.mubr.msk.bf16.mxu1 %vm2677_vm2, %v2676_v27 }
 0x273   :  { %2487 = vmatpush3.bf16.msra.mxu1 %v2641_v39 }
 0x274   :  { %2488 = vmatprep.subr.bf16.mxu1 %v2676_v27 }
 0x277   :  { %2489 = vmatpush3.bf16.msra.mxu1 %v2642_v40 }
 0x278   :  { %2490 = vmatprep.subr.bf16.mxu1 %v2676_v27 }
 0x27b   :  { %2491 = vmatpush3.bf16.msra.mxu1 %v2643_v41 }
 0x27c   :  { %2492 = vmatprep.subr.bf16.mxu1 %v2676_v27 }
 0x27f   :  { %2493 = vmatpush3.bf16.msra.mxu1 %v2644_v42 }
 0x280   :  { %2494 = vmatprep.subr.bf16.mxu1 %v2676_v27 }
 0x283   :  { %2495 = vmatpush3.bf16.msra.mxu1 %v2645_v8 }
 0x284   :  { %2496 = vmatprep.subr.bf16.mxu1 %v2676_v27 }
 0x287   :  { %2497 = vmatpush3.bf16.msra.mxu1 %v2646_v43 }
 0x288   :  { %2498 = vmatprep.subr.bf16.mxu1 %v2676_v27 }
 0x28b   :  { %2499 = vmatpush3.bf16.msra.mxu1 %v2647_v24 }
 0x341   :  { %v2446_v44 = vpop.f32.mrb[12].mxu1 }
 0x342   :  { %v2447_v28 = vpop.f32.mrb[13].mxu1  ;;  %v2043_v46 = vpop.f32.mrb[12].mxu0 }
 0x343   :  { %v2448_v47 = vadd.f32 %v2447_v28, %v2446_v44  ;;  %v2449_v48 = vpop.f32.mrb[14].mxu1  ;;  %v2482_v49 = vpop.f32.mrb[13].mxu0 }
 0x344   :  { %v2450_v50 = vpop.f32.mrb[15].mxu1  ;;  %v2046_v51 = vpop.f32.mrb[14].mxu0 }
 0x345   :  { %v2003_v52 = vadd.f32 %v2448_v47, %v2375_v45  ;;  %v2451_v53 = vadd.f32 %v2450_v50, %v2449_v48  ;;  %v2483_v27 = vpop.f32.mrb[15].mxu0 }
 0x347   :  { %v2044_v54 = vadd.f32 %v2043_v46, %v2003_v52  ;;  %v2006_v55 = vadd.f32 %v2451_v53, %v2375_v45 }
 0x349   :  { %v2047_v57 = vadd.f32 %v2046_v51, %v2006_v55  ;;  %v2050_v58 = vmax.f32 %v2044_v54, 0.0 }
 0x34b   :  { %v2051_v59 = vmax.f32 %v2047_v57, 0.0 }
 0x34d   :  { %v2052_v56 = vpack.c.bf16 %v2051_v59, %v2050_v58 }
 0x34f   :  { %2501 = vmatmul.mubr.bf16.vlgmr.msra.gmra.mrb[16].mxu1 %v2052_v56 }
 0x422   :  { %v2158_v61 = vpop.f32.mrb[16].mxu1 }
 0x423   :  { %v2159_v62 = vadd.f32 %v2399_v60, %v2158_v61  ;;  %v2502_v63 = vpop.f32.mrb[17].mxu1 }
 0x424   :  { %v2161_v0 = vpop.f32.mrb[18].mxu1 }
 0x425   :  { %2165 = vst [vmem:[%s3084_s9] sm:$0xff] %v2159_v62  ;;  %v2162_v1 = vadd.f32 %v2399_v60, %v2161_v0  ;;  %v2503_v2 = vpop.f32.mrb[19].mxu1 }
 0x427   :  { %2166 = vst [vmem:[%s3084_s9 + $0x8] sm:$0xff] %v2162_v1 }
 0x428   :  { %2171 = vsyncpa [#allocation3], 1 }

</bundles_post_ra>
